<compile_context>
chip_gen: v7x
topology: tpu7x:2x2x1
jax: 0.10.0
libtpu: 0.0.40
codegen_flags: <defaults>
</compile_context>

<pallas_src>
import math

import numpy as np

import jax
import jax.numpy as jnp
from jax.experimental import pallas as pl
from jax.experimental.pallas import tpu as pltpu


def _pos_encoding_kernel(inv_freq_ref, phase_ref, o_ref):
    """Writes one (1, TS, d_hid) tile of the sinusoid table."""
    ts = o_ref.shape[1]
    d = o_ref.shape[2]
    base = pl.program_id(0) * ts
    # Absolute position index for every row of this tile.
    pos = (base + jax.lax.broadcasted_iota(jnp.int32, (ts, d), 0)).astype(jnp.float32)
    # angle[p, j] = p * 10000^(-2*(j//2)/d_hid) + (j % 2) * pi/2
    angle = pos * inv_freq_ref[...] + phase_ref[...]        # (ts,d) * (1,d) + (1,d)
    # cos(t) == sin(t + pi/2): a single sine covers both even and odd lanes.
    o_ref[0] = jnp.sin(angle).astype(o_ref.dtype)


def positional_encoding(x, *, d_hid, n_node):
    """Forward of PositionalEncoding: returns the (1, x.shape[1], d_hid) sinusoid table.

    Matches `pos_table[:, :x.size(1)]` from the PyTorch module.  Only x's static
    sequence length is used (the forward ignores x's values).
    """
    seq = x.shape[1]
    assert seq <= n_node, "sequence length exceeds the positional table size"

    # Per-lane constants, computed in float64 (like the reference table) at trace time.
    j = np.arange(d_hid)
    inv_freq = np.power(10000.0, -(2.0 * (j // 2)) / float(d_hid))   # float64
    phase = (j % 2).astype(np.float64) * (math.pi / 2.0)
    inv_freq = jnp.asarray(inv_freq, dtype=jnp.float32).reshape(1, d_hid)
    phase = jnp.asarray(phase, dtype=jnp.float32).reshape(1, d_hid)

    # Sequence tiling: whole seq if small (block == full dim is always legal),
    # otherwise 512-row tiles (multiple of 8 sublanes, ~256 KiB f32 per buffer).
    ts = seq if seq <= 512 else 512
    grid = (pl.cdiv(seq, ts),)

    return pl.pallas_call(
        _pos_encoding_kernel,
        out_shape=jax.ShapeDtypeStruct((1, seq, d_hid), jnp.float32),
        grid=grid,
        in_specs=[
            pl.BlockSpec((1, d_hid), lambda i: (0, 0)),   # inv_freq, resident
            pl.BlockSpec((1, d_hid), lambda i: (0, 0)),   # phase, resident
        ],
        out_specs=pl.BlockSpec((1, ts, d_hid), lambda i: (0, i, 0)),
        compiler_params=pltpu.CompilerParams(
            dimension_semantics=("parallel",)),
    )(inv_freq, phase)


def _reference_pos_table(n_boundary, d_hid):
    """NumPy replica of the PyTorch _get_sinusoid_encoding_table (float64 -> float32)."""

    def get_position_angle_vec(position):
        return [position / np.power(10000, 2 * (hid_j // 2) / d_hid)
                for hid_j in range(d_hid)]

    sinusoid_table = np.array(
        [get_position_angle_vec(pos_i) for pos_i in range(n_boundary)])
    sinusoid_table[:, 0::2] = np.sin(sinusoid_table[:, 0::2])
    sinusoid_table[:, 1::2] = np.cos(sinusoid_table[:, 1::2])
    return sinusoid_table.astype(np.float32)[None]   # (1, n_boundary, d_hid)


if __name__ == "__main__":
    # Small shapes consistent with the module: d_hid=128 (lane-dense), n_node=64,
    # input x of shape (batch=2, seq=16, d_hid=128).
    B, seq, d_hid, n_node = 2, 16, 128, 64

    key = jax.random.PRNGKey(0)
    x = jax.random.normal(key, (B, seq, d_hid), dtype=jnp.float32)

    out = positional_encoding(x, d_hid=d_hid, n_node=n_node)
    out = jax.block_until_ready(out)

    ref = _reference_pos_table(n_node, d_hid)[:, :seq]   # forward slices to x.size(1)
    assert out.shape == (1, seq, d_hid), out.shape
    assert np.allclose(np.asarray(out), ref, atol=1e-4, rtol=1e-4), "mismatch vs reference"

    print("KERNEL_OK")
</pallas_src>

<mosaic_0001>
module attributes {stable_mosaic.version = 11 : i64} {
  func.func @_pos_encoding_kernel(%arg0: i32, %arg1: memref<1x128xf32, #tpu.memory_space<vmem>>, %arg2: memref<1x128xf32, #tpu.memory_space<vmem>>, %arg3: memref<1x16x128xf32, #tpu.memory_space<vmem>>) attributes {dimension_semantics = [#tpu.dimension_semantics<parallel>], iteration_bounds = array<i64: 1>, scalar_prefetch = 0 : i64, scratch_operands = 0 : i64, tpu.core_type = #tpu.core_type<tc>, window_params = [{pipeline_mode = #tpu.pipeline_mode<synchronous>, transform_indices = @transform_0, window_bounds = array<i64: 1, 128>}, {pipeline_mode = #tpu.pipeline_mode<synchronous>, transform_indices = @transform_1, window_bounds = array<i64: 1, 128>}, {transform_indices = @transform_2, window_bounds = array<i64: 1, 16, 128>}]} {
    %c16_i32 = arith.constant 16 : i32
    %0 = arith.muli %arg0, %c16_i32 : i32
    %1 = tpu.iota {dimensions = array<i32: 0>} : vector<16x128xi32>
    %2 = vector.broadcast %0 : i32 to vector<16x128xi32>
    %3 = arith.addi %2, %1 : vector<16x128xi32>
    %4 = arith.sitofp %3 : vector<16x128xi32> to vector<16x128xf32>
    %c0 = arith.constant 0 : index
    %c0_0 = arith.constant 0 : index
    %5 = vector.load %arg1[%c0, %c0_0] : memref<1x128xf32, #tpu.memory_space<vmem>>, vector<1x128xf32>
    %6 = vector.broadcast %5 : vector<1x128xf32> to vector<16x128xf32>
    %7 = arith.mulf %4, %6 : vector<16x128xf32>
    %c0_1 = arith.constant 0 : index
    %c0_2 = arith.constant 0 : index
    %8 = vector.load %arg2[%c0_1, %c0_2] : memref<1x128xf32, #tpu.memory_space<vmem>>, vector<1x128xf32>
    %9 = vector.broadcast %8 : vector<1x128xf32> to vector<16x128xf32>
    %10 = arith.addf %7, %9 : vector<16x128xf32>
    %11 = math.sin %10 : vector<16x128xf32>
    %c0_3 = arith.constant 0 : index
    %c0_4 = arith.constant 0 : index
    %c0_5 = arith.constant 0 : index
    %12 = vector.load %arg3[%c0_3, %c0_4, %c0_5] : memref<1x16x128xf32, #tpu.memory_space<vmem>>, vector<1x16x128xf32>
    %13 = vector.shape_cast %12 : vector<1x16x128xf32> to vector<16x128xf32>
    %14 = vector.shape_cast %11 : vector<16x128xf32> to vector<1x16x128xf32>
    tpu.vector_store %arg3[%c0_3, %c0_4, %c0_5], %14 {strides = array<i32>} : memref<1x16x128xf32, #tpu.memory_space<vmem>>, vector<1x16x128xf32>,
    return
  }
  func.func @transform_0(%arg0: i32) -> (i32, i32) {
    %c0_i32 = arith.constant 0 : i32
    %c0_i32_0 = arith.constant 0 : i32
    %c0_i32_1 = arith.constant 0 : i32
    return %c0_i32, %c0_i32_0 : i32, i32
  }
  func.func @transform_1(%arg0: i32) -> (i32, i32) {
    %c0_i32 = arith.constant 0 : i32
    %c0_i32_0 = arith.constant 0 : i32
    %c0_i32_1 = arith.constant 0 : i32
    return %c0_i32, %c0_i32_0 : i32, i32
  }
  func.func @transform_2(%arg0: i32) -> (i32, i32, i32) {
    %c0_i32 = arith.constant 0 : i32
    %c0_i32_0 = arith.constant 0 : i32
    %c0_i32_1 = arith.constant 0 : i32
    return %c0_i32, %arg0, %c0_i32_0 : i32, i32, i32
  }
}

</mosaic_0001>

<bundles_post_ra>
// kernel: tpu_custom_call.1
= control target key start
LH: loop header
LB: loop body
LE: loop exit
PB: predicated region body
PF: predicated region fallthrough
CT: control target
= control target key end

     0   :  { %7 = vsyncpa [#allocation3], 0  ;;  %s484_s0 = inlined_call_operand.hbm [shape: f32[1,128], index: 0, kind: input, shape index: {}]   ;;  %s485_s1 = inlined_call_operand.vmem [shape: f32[1,128], index: 1, kind: input, shape index: {}]   ;;  %s486_s2 = inlined_call_operand.hbm [shape: f32[1,16,128], index: 2, kind: output, shape index: {}]  }
   0x1   :  { %8 = vsyncpa [#allocation4], 0  ;;  %s362_s9 = smov [#allocation2]   ;;  %s314_s13 = scalar_lea.hbm %s484_s0, 16 }
   0x2   :  { %s15_s10 = sshll.u32 %s362_s9, 4  ;;  %p315_p0 = scmp.ne.s32.totalorder %s484_s0, %s314_s13  ;;  %s16_s10 = int_to_ptr.vmem [resolvable:$true] %s15_s10 }
   0x3   :  { %p318_p1 = scmp.lt.u32.totalorder %s314_s13, %s484_s0 }
   0x5   :  { %p320_p2 = pnand %p318_p1, %p315_p0 }
   0x7   :  { %323 = shalt.err (!%p320_p2)
}
   0x8   :  { %s324_s18 = scalar_lea.vmem %s16_s10, 16  ;;  %s328_s19 = scalar_lea.vmem %s16_s10, 32 }
   0x9   :  { %p325_p3 = scmp.ne.s32.totalorder %s16_s10, %s324_s18  ;;  %p329_p4 = scmp.lt.s32.totalorder %s16_s10, %s16_s10 }
   0xa   :  { %p330_p5 = scmp.lt.s32.totalorder %s328_s19, %s324_s18 }
   0xc   :  { %p331_p6 = por %p330_p5, %p329_p4 }
   0xe   :  { %p332_p7 = pnand %p331_p6, %p325_p3 }
  0x10   :  { %335 = shalt.err (!%p332_p7)
}
  0x11   :  { %18 = dma.hbm_to_vmem [thread:$0]  %s484_s0, 16, %s16_s10, [#allocation3]  }
  0x12   :  { %358 = dma.done.wait [#allocation3], 16  }
  0x13   :  { %359 = vsyncadd [#allocation3], 4294967280  ;;  %v25_v0 = vlaneseq  ;;  %v278_v5 = vld [vmem:[#allocation2] ss:$0 sm:$0xff]  ;;  %v363_v33 = vmov 683565275  }
  0x14   :  { %v279_v6 = vld [vmem:[%s485_s1] ss:$0 sm:$0xff]  ;;  %v364_v35 = vmov 2475754826   ;;  %v365_v37 = vmov 2131351028  }
  0x15   :  { %v26_v1 = vshrl.u32 %v25_v0, 7  ;;  %v366_v39 = vmov 2102212464   ;;  %v367_v41 = vmov 920167782   ;;  %s369_s0 = smov [#allocation5]  }
  0x16   :  { %v368_v49 = vmov 1326507024   ;;  %s266_s1 = sshll.u32 %s369_s0, 4  ;;  %s267_s1 = int_to_ptr.vmem [resolvable:$true] %s266_s1 }
  0x17   :  { %v31_v2 = vcvt.s32.f32 %v26_v1  ;;  %v27_v3 = vadd.s32 8, %v26_v1  ;;  %s336_s24 = scalar_lea.vmem %s267_s1, 256  ;;  %p341_p9 = scmp.lt.s32.totalorder %s267_s1, %s267_s1 }
  0x18   :  { %p337_p8 = scmp.ne.s32.totalorder %s267_s1, %s336_s24  ;;  %p342_p10 = scmp.lt.s32.totalorder %s336_s24, %s336_s24 }
  0x19   :  { %v32_v4 = vcvt.s32.f32 %v27_v3  ;;  %v40_v7 = vmul.f32 %v278_v5, %v31_v2 }
  0x1a   :  { %p343_p11 = por %p342_p10, %p341_p9 }
  0x1b   :  { %v41_v8 = vmul.f32 %v278_v5, %v32_v4  ;;  %v402_v9 = vadd.f32 %v279_v6, %v40_v7 }
  0x1c   :  { %p344_p12 = pnand %p343_p11, %p337_p8 }
  0x1d   :  { %v404_v10 = vadd.f32 %v279_v6, %v41_v8  ;;  %v51_v11 = vand.u32 2147483647, %v402_v9  ;;  %v54_v12 = vand.u32 2139095040, %v402_v9  ;;  %vm53_vm14 = vcmp.lt.s32.totalorder %v402_v9, 0 }
  0x1f   :  { %v155_v13 = vand.u32 2147483647, %v404_v10  ;;  %v158_v14 = vand.u32 2139095040, %v404_v10  ;;  %v55_v15 = vshrl.u32 %v54_v12, 23  ;;  %v58_v16 = vand.u32 8388607, %v51_v11 }
  0x20   :  { %vm52_vm15 = vcmp.le.f32.partialorder %v51_v11, 0.7853982 }
  0x21   :  { %v159_v17 = vshrl.u32 %v158_v14, 23  ;;  %v162_v18 = vand.u32 8388607, %v155_v13  ;;  %v280_v19 = vadd.s32 4294967169, %v55_v15  ;;  %v59_v22 = vor.u32 8388608, %v58_v16 }
  0x23   :  { %v284_v20 = vadd.s32 4294967169, %v159_v17  ;;  %v61_v21 = vadd.s32 1, %v280_v19  ;;  %v163_v23 = vor.u32 8388608, %v162_v18  ;;  %v414_v29 = vshll.u32 %v59_v22, 8 }
  0x25   :  { %v165_v24 = vadd.s32 1, %v284_v20  ;;  %vm62_vm0 = vcmp.gt.s32.totalorder %v61_v21, 0  ;;  %v416_v31 = vshll.u32 %v163_v23, 8 }
  0x26   :  { %v63_v25 = vsel %vm62_vm0, %v61_v21, 0  ;;  %vm157_vm0 = vcmp.lt.s32.totalorder %v404_v10, 0 }
  0x27   :  { %vm166_vm1 = vcmp.gt.s32.totalorder %v165_v24, 0  ;;  %v64_v26 = vshrl.u32 %v63_v25, 5  ;;  %v65_v27 = vand.u32 31, %v63_v25 }
  0x28   :  { %v167_v28 = vsel %vm166_vm1, %v165_v24, 0  ;;  %vm156_vm1 = vcmp.le.f32.partialorder %v155_v13, 0.7853982 }
  0x29   :  { %v169_v30 = vand.u32 31, %v167_v28  ;;  %v66_v32 = vsub.s32 32, %v65_v27  ;;  %v68_v34 = vshll.u32 %v363_v33, %v65_v27  ;;  %v71_v36 = vshll.u32 %v364_v35, %v65_v27 }
  0x2a   :  { %v74_v38 = vshll.u32 %v365_v37, %v65_v27  ;;  %v77_v40 = vshll.u32 %v366_v39, %v65_v27  ;;  %v80_v42 = vshll.u32 %v367_v41, %v65_v27  ;;  %vm83_vm2 = vcmp.lt.s32.totalorder %v64_v26, 1 }
  0x2b   :  { %v418_v43 = vshrl.u32 %v167_v28, 5  ;;  %v67_v44 = vshrl.u32 %v363_v33, %v66_v32  ;;  %v69_v45 = vshrl.u32 %v364_v35, %v66_v32  ;;  %v72_v46 = vshrl.u32 %v365_v37, %v66_v32 }
  0x2c   :  { %v75_v47 = vshrl.u32 %v366_v39, %v66_v32  ;;  %v78_v48 = vshrl.u32 %v367_v41, %v66_v32  ;;  %v81_v50 = vshrl.u32 %v368_v49, %v66_v32  ;;  %vm84_vm3 = vcmp.lt.s32.totalorder %v64_v26, 2 }
  0x2d   :  { %vm86_vm4 = vcmp.lt.s32.totalorder %v64_v26, 4  ;;  %v70_v51 = vor.u32 %v69_v45, %v68_v34  ;;  %v73_v52 = vor.u32 %v72_v46, %v71_v36  ;;  %v170_v54 = vsub.s32 32, %v169_v30 }
  0x2e   :  { %v76_v53 = vor.u32 %v75_v47, %v74_v38  ;;  %v79_v55 = vor.u32 %v78_v48, %v77_v40  ;;  %v82_v56 = vor.u32 %v81_v50, %v80_v42  ;;  %vm85_vm5 = vcmp.lt.s32.totalorder %v64_v26, 3 }
  0x2f   :  { %v172_v57 = vshll.u32 %v363_v33, %v169_v30  ;;  %v87_v58 = vsel %vm83_vm2, %v67_v44, %v70_v51  ;;  %v91_v60 = vsel %vm83_vm2, %v70_v51, %v73_v52  ;;  %v175_v1 = vshll.u32 %v364_v35, %v169_v30 }
  0x30   :  { %v88_v59 = vsel %vm86_vm4, %v76_v53, 2102212464  ;;  %v95_v61 = vsel %vm83_vm2, %v73_v52, %v76_v53  ;;  %v92_v63 = vsel %vm86_vm4, %v79_v55, 920167782  ;;  %v96_v0 = vsel %vm86_vm4, %v82_v56, 1326507024 }
  0x31   :  { %v89_v62 = vsel %vm85_vm5, %v73_v52, %v88_v59  ;;  %v93_v2 = vsel %vm85_vm5, %v76_v53, %v92_v63  ;;  %v97_v3 = vsel %vm85_vm5, %v79_v55, %v96_v0  ;;  %v171_v4 = vshrl.u32 %v363_v33, %v170_v54 }
  0x32   :  { %v173_v5 = vshrl.u32 %v364_v35, %v170_v54  ;;  %v90_v6 = vsel %vm84_vm3, %v87_v58, %v89_v62  ;;  %v94_v7 = vsel %vm84_vm3, %v91_v60, %v93_v2  ;;  %v98_v8 = vsel %vm84_vm3, %v95_v61, %v97_v3 }
  0x33   :  { %v176_v12 = vshrl.u32 %v365_v37, %v170_v54  ;;  %v427_v14 = vmul.u32.u64.low %v414_v29, %v98_v8  ;;  %v428_v15 = vmul.u32.u64.high %v414_v29, %v98_v8, %v427_v14  ;;  %v178_v20 = vshll.u32 %v365_v37, %v169_v30 }
  0x34   :  { %v431_v16 = vmul.u32.u64.low %v414_v29, %v94_v7  ;;  %v432_v17 = vmul.u32.u64.high %v414_v29, %v94_v7, %v431_v16  ;;  %v174_v18 = vor.u32 %v173_v5, %v172_v57  ;;  %v179_v21 = vshrl.u32 %v366_v39, %v170_v54 }
  0x35   :  { %v177_v19 = vor.u32 %v176_v12, %v175_v1  ;;  %v181_v22 = vshll.u32 %v366_v39, %v169_v30  ;;  %v182_v23 = vshrl.u32 %v367_v41, %v170_v54  ;;  %v184_v24 = vshll.u32 %v367_v41, %v169_v30 }
  0x36   :  { %v185_v25 = vshrl.u32 %v368_v49, %v170_v54  ;;  %v106_v26 = vmul.u32 %v414_v29, %v90_v6  ;;  %v180_v27 = vor.u32 %v179_v21, %v178_v20  ;;  %vm187_vm6 = vcmp.lt.s32.totalorder %v418_v43, 1 }
  0x37   :  { %vm188_vm7 = vcmp.lt.s32.totalorder %v418_v43, 2  ;;  %vm108_vm8 = vc.u32 %v428_v15, %v431_v16  ;;  %v109_v28 = vadd.s32 1, %v432_v17  ;;  %v183_v32 = vor.u32 %v182_v23, %v181_v22 }
  0x38   :  { %vm189_vm9 = vcmp.lt.s32.totalorder %v418_v43, 3  ;;  %v186_v33 = vor.u32 %v185_v25, %v184_v24  ;;  %vm190_vm10 = vcmp.lt.s32.totalorder %v418_v43, 4  ;;  %v191_v34 = vsel %vm187_vm6, %v171_v4, %v174_v18 }
  0x39   :  { %v195_v30 = vsel %vm187_vm6, %v174_v18, %v177_v19  ;;  %v110_v35 = vsel %vm108_vm8, %v109_v28, %v432_v17  ;;  %v192_v29 = vsel %vm190_vm10, %v180_v27, 2102212464  ;;  %v196_v36 = vsel %vm190_vm10, %v183_v32, 920167782 }
  0x3a   :  { %v199_v37 = vsel %vm187_vm6, %v177_v19, %v180_v27  ;;  %v111_v38 = vadd.s32 %v110_v35, %v106_v26  ;;  %v193_v39 = vsel %vm189_vm9, %v177_v19, %v192_v29  ;;  %v197_v40 = vsel %vm189_vm9, %v180_v27, %v196_v36 }
  0x3b   :  { %v200_v41 = vsel %vm190_vm10, %v186_v33, 1326507024  ;;  %v194_v42 = vsel %vm188_vm7, %v191_v34, %v193_v39  ;;  %v198_v44 = vsel %vm188_vm7, %v195_v30, %v197_v40  ;;  %v107_v2 = vadd.s32 %v431_v16, %v428_v15 }
  0x3c   :  { %v201_v45 = vsel %vm189_vm9, %v183_v32, %v200_v41  ;;  %v112_v46 = vadd.s32 536870912, %v111_v38  ;;  %v449_v48 = vmul.u32.u64.low %v416_v31, %v198_v44  ;;  %v450_v49 = vmul.u32.u64.high %v416_v31, %v198_v44, %v449_v48 }
  0x3d   :  { %v202_v47 = vsel %vm188_vm7, %v199_v37, %v201_v45  ;;  %v210_v53 = vmul.u32 %v416_v31, %v194_v42  ;;  %vm143_vm5 = vweird.f32 %v402_v9  ;;  %vm247_vm9 = vweird.f32 %v404_v10 }
  0x3e   :  { %v453_v50 = vmul.u32.u64.low %v416_v31, %v202_v47  ;;  %v454_v51 = vmul.u32.u64.high %v416_v31, %v202_v47, %v453_v50  ;;  %v113_v52 = vshrl.u32 %v112_v46, 30  ;;  %v213_v55 = vadd.s32 1, %v450_v49 }
  0x40   :  { %v114_v54 = vshll.u32 %v113_v52, 30  ;;  %vm212_vm11 = vc.u32 %v454_v51, %v449_v48  ;;  %v211_v22 = vadd.s32 %v449_v48, %v454_v51  ;;  %v137_v15 = vsub.s32 4, %v113_v52 }
  0x41   :  { %v214_v43 = vsel %vm212_vm11, %v213_v55, %v450_v49 }
  0x42   :  { %v115_v56 = vsub.s32 %v111_v38, %v114_v54  ;;  %v215_v57 = vadd.s32 %v214_v43, %v210_v53  ;;  %v138_v34 = vsel %vm53_vm14, %v137_v15, %v113_v52 }
  0x43   :  { %v140_v37 = vsel %vm52_vm15, 0, %v138_v34 }
  0x44   :  { %v117_v58 = vsub.s32 0, %v115_v56  ;;  %v216_v59 = vadd.s32 536870912, %v215_v57  ;;  %v144_v42 = vadd.s32 3, %v140_v37 }
  0x46   :  { %v281_v60 = vmin.u32 %v117_v58, %v115_v56  ;;  %v217_v61 = vshrl.u32 %v216_v59, 30  ;;  %v145_v46 = vand.u32 3, %v144_v42 }
  0x48   :  { %v119_v62 = vclz %v281_v60  ;;  %v218_v63 = vshll.u32 %v217_v61, 30  ;;  %v241_v41 = vsub.s32 4, %v217_v61  ;;  %vm150_vm2 = vcmp.eq.s32.totalorder %v145_v46, 2 }
  0x49   :  { %vm147_vm3 = vcmp.eq.s32.totalorder %v145_v46, 0  ;;  %vm146_vm4 = vcmp.lt.s32.totalorder %v145_v46, 2 }
  0x4a   :  { %v282_v0 = vadd.s32 4294967294, %v119_v62  ;;  %v219_v1 = vsub.s32 %v215_v57, %v218_v63  ;;  %v242_v45 = vsel %vm157_vm0, %v241_v41, %v217_v61 }
  0x4b   :  { %v244_v49 = vsel %vm156_vm1, 0, %v242_v45 }
  0x4c   :  { %vm283_vm12 = vcmp.lt.s32.totalorder %v282_v0, 0  ;;  %v221_v3 = vsub.s32 0, %v219_v1  ;;  %v248_v53 = vadd.s32 3, %v244_v49 }
  0x4d   :  { %v122_v31 = vsel %vm283_vm12, 0, %v282_v0 }
  0x4e   :  { %v123_v4 = vsub.s32 32, %v122_v31  ;;  %v124_v5 = vshll.u32 %v115_v56, %v122_v31  ;;  %v127_v6 = vsub.s32 4294967266, %v122_v31  ;;  %v285_v7 = vmin.u32 %v221_v3, %v219_v1 }
  0x4f   :  { %v249_v43 = vand.u32 3, %v248_v53 }
  0x50   :  { %v125_v8 = vshrl.u32 %v107_v2, %v123_v4  ;;  %v128_v12 = vadd.s32 127, %v127_v6  ;;  %v223_v14 = vclz %v285_v7 }
  0x51   :  { %vm254_vm6 = vcmp.eq.s32.totalorder %v249_v43, 2  ;;  %vm251_vm7 = vcmp.eq.s32.totalorder %v249_v43, 0  ;;  %vm250_vm8 = vcmp.lt.s32.totalorder %v249_v43, 2 }
  0x52   :  { %v126_v17 = vor.u32 %v125_v8, %v124_v5  ;;  %v129_v18 = vshll.u32 %v128_v12, 23  ;;  %v286_v19 = vadd.s32 4294967294, %v223_v14 }
  0x54   :  { %v130_v20 = vor.u32 4788187, %v129_v18  ;;  %v133_v21 = vcvt.s32.f32 %v126_v17  ;;  %vm287_vm13 = vcmp.lt.s32.totalorder %v286_v19, 0 }
  0x55   :  { %v226_v16 = vsel %vm287_vm13, 0, %v286_v19 }
  0x56   :  { %v131_v23 = vand.u32 2147483647, %v130_v20  ;;  %v227_v24 = vsub.s32 32, %v226_v16  ;;  %v228_v25 = vshll.u32 %v219_v1, %v226_v16  ;;  %v231_v26 = vsub.s32 4294967266, %v226_v16 }
  0x58   :  { %v134_v27 = vmul.f32 %v133_v21, %v131_v23  ;;  %v229_v28 = vshrl.u32 %v211_v22, %v227_v24  ;;  %v232_v32 = vadd.s32 127, %v231_v26 }
  0x5a   :  { %v135_v33 = vxor.u32 2147483648, %v134_v27  ;;  %v230_v30 = vor.u32 %v229_v28, %v228_v25  ;;  %v233_v35 = vshll.u32 %v232_v32, 23 }
  0x5c   :  { %v136_v29 = vsel %vm53_vm14, %v135_v33, %v134_v27  ;;  %v234_v38 = vor.u32 4788187, %v233_v35  ;;  %v237_v39 = vcvt.s32.f32 %v230_v30 }
  0x5d   :  { %v139_v36 = vsel %vm52_vm15, %v402_v9, %v136_v29 }
  0x5e   :  { %306 = vcosq.f32 %v139_v36  ;;  %v235_v40 = vand.u32 2147483647, %v234_v38 }
  0x5f   :  { %308 = vsinq.f32 %v139_v36 }
  0x60   :  { %v238_v44 = vmul.f32 %v237_v39, %v235_v40 }
  0x62   :  { %v239_v11 = vxor.u32 2147483648, %v238_v44 }
  0x64   :  { %v240_v47 = vsel %vm157_vm0, %v239_v11, %v238_v44 }
  0x65   :  { %v243_v48 = vsel %vm156_vm1, %v404_v10, %v240_v47 }
  0x66   :  { %310 = vcosq.f32 %v243_v48 }
  0x67   :  { %312 = vsinq.f32 %v243_v48 }
  0x68   :  { %v307_v50 = vpop.eup %306 }
  0x69   :  { %v309_v51 = vpop.eup %308  ;;  %v151_v52 = vxor.u32 2147483648, %v307_v50 }
  0x6a   :  { %v148_v54 = vxor.u32 2147483648, %v309_v51 }
  0x6b   :  { %v152_v13 = vsel %vm150_vm2, %v151_v52, %v309_v51 }
  0x6c   :  { %v149_v55 = vsel %vm147_vm3, %v307_v50, %v148_v54 }
  0x6d   :  { %v153_v56 = vsel %vm146_vm4, %v149_v55, %v152_v13 }
  0x6e   :  { %v154_v57 = vsel %vm143_vm5, nan, %v153_v56 }
  0x6f   :  { %259 = vst [vmem:[#allocation5] sm:$0xff] %v154_v57 }
  0x70   :  { %v311_v58 = vpop.eup %310 }
  0x71   :  { %v313_v59 = vpop.eup %312  ;;  %v255_v60 = vxor.u32 2147483648, %v311_v58 }
  0x72   :  { %v252_v61 = vxor.u32 2147483648, %v313_v59 }
  0x73   :  { %v256_v62 = vsel %vm254_vm6, %v255_v60, %v313_v59 }
  0x74   :  { %v253_v63 = vsel %vm251_vm7, %v311_v58, %v252_v61 }
  0x75   :  { %v257_v9 = vsel %vm250_vm8, %v253_v63, %v256_v62 }
  0x76   :  { %v258_v0 = vsel %vm247_vm9, nan, %v257_v9 }
  0x77   :  { %260 = vst [vmem:[#allocation5 + $0x8] sm:$0xff] %v258_v0 }
  0x78   :  { %347 = shalt.err (!%p344_p12)
}
  0x79   :  { %s348_s27 = scalar_lea.hbm %s486_s2, 256 }
  0x7a   :  { %p349_p13 = scmp.ne.s32.totalorder %s486_s2, %s348_s27  ;;  %p352_p0 = scmp.lt.u32.totalorder %s348_s27, %s486_s2 }
  0x7c   :  { %p354_p1 = pnand %p352_p0, %p349_p13 }
  0x7e   :  { %357 = shalt.err (!%p354_p1)
}
  0x7f   :  { %s370_s4 = smov 128   ;;  %s371_s5 = smov 8  }
  0x80   :  { %272 = dma.vmem_to_hbm [thread:$0]  %s267_s1, 256, %s486_s2, [#allocation4], %s370_s4, %s370_s4, %s371_s5  }
  0x81   :  { %360 = dma.done.wait [#allocation4], 256  }
  0x82   :  { %361 = vsyncadd [#allocation4], 4294967040 }
  0x83   :  { %276 = vsyncpa [#allocation3], 1 }
  0x84   :  { %277 = vsyncpa [#allocation4], 1 }

</bundles_post_ra>
